<compile_context>
chip_gen: v5e
topology: v5e:2x2
jax: 0.10.0
libtpu: 0.0.40
codegen_flags: <defaults>
</compile_context>

<pallas_src>
import functools

import jax
import jax.numpy as jnp
from jax.experimental import pallas as pl
from jax.experimental.pallas import tpu as pltpu

LEAKY_SLOPE = 0.01   # nn.LeakyReLU default negative_slope
LANE = 128           # TPU lane width
SUBLANE = 8
BN_EPS = 1e-5


def _round_up(n, m):
    return ((n + m - 1) // m) * m


# ---------------------------------------------------------------------------
# Kernel: one batch tile, whole (BN-folded) MLP runs on-chip.
# refs layout:  [W_0, b_0, W_1, b_1, ..., W_out, b_out, o_ref]
#   x_ref : (TB, in_pad)           bf16
#   W_l   : (d_in_pad, d_out_pad)  bf16
#   b_l   : (1, d_out_pad)         f32
#   o_ref : (TB, out_pad)          f32
# ---------------------------------------------------------------------------
def _mlp_kernel(num_hidden_layers, x_ref, *refs):
    o_ref = refs[-1]
    p = refs[:-1]

    h = x_ref[...]                                   # bf16, fed straight to the MXU
    for l in range(num_hidden_layers):
        w = p[2 * l][...]                            # bf16 (BN folded in)
        b = p[2 * l + 1][...]                        # f32 (1, d)
        z = jnp.dot(h, w, preferred_element_type=jnp.float32) + b
        z = jnp.maximum(z, LEAKY_SLOPE * z)          # LeakyReLU: vmul + vmax, no mask
        h = z.astype(jnp.bfloat16)

    w_out = p[-2][...]
    b_out = p[-1][...]
    o_ref[...] = jnp.dot(h, w_out, preferred_element_type=jnp.float32) + b_out


# ---------------------------------------------------------------------------
# Wrapper
# ---------------------------------------------------------------------------
def simple_mlp(x, packed):
    """x: (B, in_features) f32.  packed: output of pack_params().  -> (B, out_features)."""
    layers = packed["layers"]                 # list of (W_bf16, b_f32)
    w_out, b_out = packed["out"]
    in_features = packed["in_features"]
    out_features = packed["out_features"]

    B = x.shape[0]
    in_pad = layers[0][0].shape[0] if layers else w_out.shape[0]
    out_pad = w_out.shape[1]

    # Batch tile: multiple of the 8-row sublane, up to 512 rows to amortize the
    # per-grid-step overhead; weights stay resident so only x/o tiles scale with tb.
    tb = min(_round_up(B, SUBLANE), 512)
    num_tiles = pl.cdiv(B, tb)
    pad_b = num_tiles * tb                    # >= B; surplus rows are sliced off below

    # bf16 input, feature-dim padding only (no full padded batch copy of x in HBM).
    x_bf = x.astype(jnp.bfloat16)
    if in_pad != in_features:
        x_bf = jnp.pad(x_bf, ((0, 0), (0, in_pad - in_features)))

    args = [x_bf]
    for (w, b) in layers:
        args += [w, b]
    args += [w_out, b_out]

    # VMEM budget: resident params (single-buffered) + double-buffered x/o tiles
    # + activation slack, clamped to the v7x 64 MiB per-core ceiling.
    param_bytes = sum(int(a.size) * a.dtype.itemsize for a in args[1:])
    io_bytes = 2 * tb * in_pad * 2 + 2 * tb * out_pad * 4
    widest = max([in_pad, out_pad] + [w.shape[1] for (w, _) in layers])
    act_bytes = 4 * tb * widest * 4
    vmem_limit = int(min(max(2 * (param_bytes + io_bytes + act_bytes), 16 << 20), 64 << 20))

    def build_call(weight_mode):
        in_specs = [pl.BlockSpec((tb, in_pad), lambda i: (i, 0))]
        for a in args[1:]:
            in_specs.append(
                pl.BlockSpec(a.shape, lambda i: (0, 0), pipeline_mode=weight_mode))
        return pl.pallas_call(
            functools.partial(_mlp_kernel, len(layers)),
            out_shape=jax.ShapeDtypeStruct((pad_b, out_pad), jnp.float32),
            grid_spec=pltpu.PrefetchScalarGridSpec(
                num_scalar_prefetch=0,
                grid=(num_tiles,),
                in_specs=in_specs,
                out_specs=pl.BlockSpec((tb, out_pad), lambda i: (i, 0)),
            ),
            compiler_params=pltpu.CompilerParams(
                dimension_semantics=("parallel",),   # batch tiles -> v7x megacore
                vmem_limit_bytes=vmem_limit,
            ),
        )

    try:
        # Constant-index params: single buffer (nothing to prefetch across grid steps).
        y = build_call(pl.Buffered(buffer_count=1))(*args)
    except Exception:
        # Fallback for jax versions that reject single-buffered pipeline_mode.
        y = build_call(None)(*args)

    return y[:B, :out_features]


# ---------------------------------------------------------------------------
# Parameter prep: fold eval-mode BatchNorm into the next Linear, pad to lane
# width, cast weights to bf16.
# ---------------------------------------------------------------------------
def _fold_batchnorm(raw):
    layers = []
    scale, shift = None, None
    for layer in raw["hidden"]:
        w, b = layer["w"], layer["b"]
        if scale is not None:
            b = shift @ w + b                  # uses the ORIGINAL w
            w = scale[:, None] * w
        layers.append((w, b))
        s = layer["gamma"] / jnp.sqrt(layer["var"] + BN_EPS)
        scale = s
        shift = layer["beta"] - layer["mean"] * s

    w_out, b_out = raw["w_out"], raw["b_out"]
    if scale is not None:
        b_out = shift @ w_out + b_out
        w_out = scale[:, None] * w_out
    return layers, (w_out, b_out)


def pack_params(raw):
    layers, (w_out, b_out) = _fold_batchnorm(raw)

    def pad_layer(w, b):
        d_in, d_out = w.shape
        w_p = jnp.zeros((_round_up(d_in, LANE), _round_up(d_out, LANE)), jnp.float32)
        w_p = w_p.at[:d_in, :d_out].set(w).astype(jnp.bfloat16)
        b_p = jnp.zeros((1, _round_up(d_out, LANE)), jnp.float32).at[0, :d_out].set(b)
        return w_p, b_p

    packed_layers = [pad_layer(w, b) for (w, b) in layers]
    w_out_p, b_out_p = pad_layer(w_out, b_out)

    in_features = raw["hidden"][0]["w"].shape[0] if raw["hidden"] else raw["w_out"].shape[0]
    return {
        "layers": packed_layers,
        "out": (w_out_p, b_out_p),
        "in_features": in_features,
        "out_features": raw["w_out"].shape[1],
    }


# ---------------------------------------------------------------------------
# Synthetic parameters + pure-JAX reference (original, unfolded semantics).
# ---------------------------------------------------------------------------
def init_raw_params(key, in_features, intermediate_size, num_hidden_layers, out_features):
    hidden = []
    n_in = in_features
    for _ in range(num_hidden_layers):
        key, kw, kb, kg, kbeta, km, kv = jax.random.split(key, 7)
        hidden.append({
            "w": 0.1 * jax.random.normal(kw, (n_in, intermediate_size), jnp.float32),
            "b": 0.1 * jax.random.normal(kb, (intermediate_size,), jnp.float32),
            "gamma": 1.0 + 0.1 * jax.random.normal(kg, (intermediate_size,), jnp.float32),
            "beta": 0.1 * jax.random.normal(kbeta, (intermediate_size,), jnp.float32),
            "mean": 0.1 * jax.random.normal(km, (intermediate_size,), jnp.float32),
            "var": jax.random.uniform(kv, (intermediate_size,), jnp.float32, 0.5, 1.5),
        })
        n_in = intermediate_size

    key, kw, kb = jax.random.split(key, 3)
    w_out = 0.1 * jax.random.normal(kw, (n_in, out_features), jnp.float32)
    b_out = 0.1 * jax.random.normal(kb, (out_features,), jnp.float32)
    return {"hidden": hidden, "w_out": w_out, "b_out": b_out}


def reference_forward(x, raw):
    h = x
    for layer in raw["hidden"]:
        z = h @ layer["w"] + layer["b"]
        z = jnp.where(z > 0, z, LEAKY_SLOPE * z)
        h = (z - layer["mean"]) / jnp.sqrt(layer["var"] + BN_EPS) * layer["gamma"] + layer["beta"]
    return h @ raw["w_out"] + raw["b_out"]


if __name__ == "__main__":
    B = 8
    in_features = 16
    intermediate_size = 32
    num_hidden_layers = 2
    out_features = 8

    key = jax.random.PRNGKey(0)
    key, kx = jax.random.split(key)
    x = jax.random.normal(kx, (B, in_features), jnp.float32)

    raw = init_raw_params(key, in_features, intermediate_size, num_hidden_layers, out_features)
    packed = pack_params(raw)

    y = simple_mlp(x, packed)
    y = jax.block_until_ready(y)

    y_ref = reference_forward(x, raw)
    assert y.shape == (B, out_features), y.shape
    # bf16 weights/activations in the matmuls -> allow a modest tolerance vs f32 reference.
    assert jnp.allclose(y, y_ref, atol=2e-2, rtol=5e-2), "mismatch vs JAX reference"

    print("KERNEL_OK")
</pallas_src>

<mosaic_0001>
module attributes {stable_mosaic.version = 11 : i64} {
  func.func @_mlp_kernel(%arg0: i32, %arg1: memref<8x128xbf16, #tpu.memory_space<vmem>>, %arg2: memref<128x128xbf16, #tpu.memory_space<vmem>>, %arg3: memref<1x128xf32, #tpu.memory_space<vmem>>, %arg4: memref<128x128xbf16, #tpu.memory_space<vmem>>, %arg5: memref<1x128xf32, #tpu.memory_space<vmem>>, %arg6: memref<128x128xbf16, #tpu.memory_space<vmem>>, %arg7: memref<1x128xf32, #tpu.memory_space<vmem>>, %arg8: memref<8x128xf32, #tpu.memory_space<vmem>>) attributes {dimension_semantics = [#tpu.dimension_semantics<parallel>], iteration_bounds = array<i64: 1>, scalar_prefetch = 0 : i64, scratch_operands = 0 : i64, tpu.core_type = #tpu.core_type<tc>, window_params = [{transform_indices = @transform_0, window_bounds = array<i64: 8, 128>}, {pipeline_mode = #tpu.pipeline_mode<synchronous>, transform_indices = @transform_1, window_bounds = array<i64: 128, 128>}, {pipeline_mode = #tpu.pipeline_mode<synchronous>, transform_indices = @transform_2, window_bounds = array<i64: 1, 128>}, {pipeline_mode = #tpu.pipeline_mode<synchronous>, transform_indices = @transform_3, window_bounds = array<i64: 128, 128>}, {pipeline_mode = #tpu.pipeline_mode<synchronous>, transform_indices = @transform_4, window_bounds = array<i64: 1, 128>}, {pipeline_mode = #tpu.pipeline_mode<synchronous>, transform_indices = @transform_5, window_bounds = array<i64: 128, 128>}, {pipeline_mode = #tpu.pipeline_mode<synchronous>, transform_indices = @transform_6, window_bounds = array<i64: 1, 128>}, {transform_indices = @transform_7, window_bounds = array<i64: 8, 128>}]} {
    %c0 = arith.constant 0 : index
    %c0_0 = arith.constant 0 : index
    %0 = vector.load %arg1[%c0, %c0_0] : memref<8x128xbf16, #tpu.memory_space<vmem>>, vector<8x128xbf16>
    %c0_1 = arith.constant 0 : index
    %c0_2 = arith.constant 0 : index
    %1 = vector.load %arg2[%c0_1, %c0_2] : memref<128x128xbf16, #tpu.memory_space<vmem>>, vector<128x128xbf16>
    %c0_3 = arith.constant 0 : index
    %c0_4 = arith.constant 0 : index
    %2 = vector.load %arg3[%c0_3, %c0_4] : memref<1x128xf32, #tpu.memory_space<vmem>>, vector<1x128xf32>
    %cst = arith.constant dense<0.000000e+00> : vector<8x128xf32>
    %3 = tpu.matmul %0, %1, %cst {dimension_numbers = #tpu.dot_dimension_numbers<[1], [0], [0], [1], [0, 0, 1, 1], [], []>} : vector<8x128xbf16>, vector<128x128xbf16>, vector<8x128xf32> -> vector<8x128xf32>
    %4 = vector.broadcast %2 : vector<1x128xf32> to vector<8x128xf32>
    %5 = arith.addf %3, %4 : vector<8x128xf32>
    %cst_5 = arith.constant 0.00999999977 : f32
    %6 = vector.broadcast %cst_5 : f32 to vector<8x128xf32>
    %7 = arith.mulf %6, %5 : vector<8x128xf32>
    %8 = arith.maximumf %5, %7 : vector<8x128xf32>
    %9 = arith.truncf %8 : vector<8x128xf32> to vector<8x128xbf16>
    %c0_6 = arith.constant 0 : index
    %c0_7 = arith.constant 0 : index
    %10 = vector.load %arg4[%c0_6, %c0_7] : memref<128x128xbf16, #tpu.memory_space<vmem>>, vector<128x128xbf16>
    %c0_8 = arith.constant 0 : index
    %c0_9 = arith.constant 0 : index
    %11 = vector.load %arg5[%c0_8, %c0_9] : memref<1x128xf32, #tpu.memory_space<vmem>>, vector<1x128xf32>
    %cst_10 = arith.constant dense<0.000000e+00> : vector<8x128xf32>
    %12 = tpu.matmul %9, %10, %cst_10 {dimension_numbers = #tpu.dot_dimension_numbers<[1], [0], [0], [1], [0, 0, 1, 1], [], []>} : vector<8x128xbf16>, vector<128x128xbf16>, vector<8x128xf32> -> vector<8x128xf32>
    %13 = vector.broadcast %11 : vector<1x128xf32> to vector<8x128xf32>
    %14 = arith.addf %12, %13 : vector<8x128xf32>
    %cst_11 = arith.constant 0.00999999977 : f32
    %15 = vector.broadcast %cst_11 : f32 to vector<8x128xf32>
    %16 = arith.mulf %15, %14 : vector<8x128xf32>
    %17 = arith.maximumf %14, %16 : vector<8x128xf32>
    %18 = arith.truncf %17 : vector<8x128xf32> to vector<8x128xbf16>
    %c0_12 = arith.constant 0 : index
    %c0_13 = arith.constant 0 : index
    %19 = vector.load %arg6[%c0_12, %c0_13] : memref<128x128xbf16, #tpu.memory_space<vmem>>, vector<128x128xbf16>
    %c0_14 = arith.constant 0 : index
    %c0_15 = arith.constant 0 : index
    %20 = vector.load %arg7[%c0_14, %c0_15] : memref<1x128xf32, #tpu.memory_space<vmem>>, vector<1x128xf32>
    %cst_16 = arith.constant dense<0.000000e+00> : vector<8x128xf32>
    %21 = tpu.matmul %18, %19, %cst_16 {dimension_numbers = #tpu.dot_dimension_numbers<[1], [0], [0], [1], [0, 0, 1, 1], [], []>} : vector<8x128xbf16>, vector<128x128xbf16>, vector<8x128xf32> -> vector<8x128xf32>
    %22 = vector.broadcast %20 : vector<1x128xf32> to vector<8x128xf32>
    %23 = arith.addf %21, %22 : vector<8x128xf32>
    %c0_17 = arith.constant 0 : index
    %c0_18 = arith.constant 0 : index
    %24 = vector.load %arg8[%c0_17, %c0_18] : memref<8x128xf32, #tpu.memory_space<vmem>>, vector<8x128xf32>
    tpu.vector_store %arg8[%c0_17, %c0_18], %23 {strides = array<i32>} : memref<8x128xf32, #tpu.memory_space<vmem>>, vector<8x128xf32>,
    return
  }
  func.func @transform_0(%arg0: i32) -> (i32, i32) {
    %c0_i32 = arith.constant 0 : i32
    %c0_i32_0 = arith.constant 0 : i32
    return %arg0, %c0_i32 : i32, i32
  }
  func.func @transform_1(%arg0: i32) -> (i32, i32) {
    %c0_i32 = arith.constant 0 : i32
    %c0_i32_0 = arith.constant 0 : i32
    %c0_i32_1 = arith.constant 0 : i32
    return %c0_i32, %c0_i32_0 : i32, i32
  }
  func.func @transform_2(%arg0: i32) -> (i32, i32) {
    %c0_i32 = arith.constant 0 : i32
    %c0_i32_0 = arith.constant 0 : i32
    %c0_i32_1 = arith.constant 0 : i32
    return %c0_i32, %c0_i32_0 : i32, i32
  }
  func.func @transform_3(%arg0: i32) -> (i32, i32) {
    %c0_i32 = arith.constant 0 : i32
    %c0_i32_0 = arith.constant 0 : i32
    %c0_i32_1 = arith.constant 0 : i32
    return %c0_i32, %c0_i32_0 : i32, i32
  }
  func.func @transform_4(%arg0: i32) -> (i32, i32) {
    %c0_i32 = arith.constant 0 : i32
    %c0_i32_0 = arith.constant 0 : i32
    %c0_i32_1 = arith.constant 0 : i32
    return %c0_i32, %c0_i32_0 : i32, i32
  }
  func.func @transform_5(%arg0: i32) -> (i32, i32) {
    %c0_i32 = arith.constant 0 : i32
    %c0_i32_0 = arith.constant 0 : i32
    %c0_i32_1 = arith.constant 0 : i32
    return %c0_i32, %c0_i32_0 : i32, i32
  }
  func.func @transform_6(%arg0: i32) -> (i32, i32) {
    %c0_i32 = arith.constant 0 : i32
    %c0_i32_0 = arith.constant 0 : i32
    %c0_i32_1 = arith.constant 0 : i32
    return %c0_i32, %c0_i32_0 : i32, i32
  }
  func.func @transform_7(%arg0: i32) -> (i32, i32) {
    %c0_i32 = arith.constant 0 : i32
    %c0_i32_0 = arith.constant 0 : i32
    return %arg0, %c0_i32 : i32, i32
  }
}

module attributes {stable_mosaic.version = 11 : i64} {
  func.func @_mlp_kernel(%arg0: i32, %arg1: memref<8x128xbf16, #tpu.memory_space<vmem>>, %arg2: memref<128x128xbf16, #tpu.memory_space<vmem>>, %arg3: memref<1x128xf32, #tpu.memory_space<vmem>>, %arg4: memref<128x128xbf16, #tpu.memory_space<vmem>>, %arg5: memref<1x128xf32, #tpu.memory_space<vmem>>, %arg6: memref<128x128xbf16, #tpu.memory_space<vmem>>, %arg7: memref<1x128xf32, #tpu.memory_space<vmem>>, %arg8: memref<8x128xf32, #tpu.memory_space<vmem>>) attributes {dimension_semantics = [#tpu.dimension_semantics<parallel>], iteration_bounds = array<i64: 1>, scalar_prefetch = 0 : i64, scratch_operands = 0 : i64, tpu.core_type = #tpu.core_type<tc>, window_params = [{transform_indices = @transform_0, window_bounds = array<i64: 8, 128>}, {pipeline_mode = #tpu.pipeline_mode<synchronous>, transform_indices = @transform_1, window_bounds = array<i64: 128, 128>}, {pipeline_mode = #tpu.pipeline_mode<synchronous>, transform_indices = @transform_2, window_bounds = array<i64: 1, 128>}, {pipeline_mode = #tpu.pipeline_mode<synchronous>, transform_indices = @transform_3, window_bounds = array<i64: 128, 128>}, {pipeline_mode = #tpu.pipeline_mode<synchronous>, transform_indices = @transform_4, window_bounds = array<i64: 1, 128>}, {pipeline_mode = #tpu.pipeline_mode<synchronous>, transform_indices = @transform_5, window_bounds = array<i64: 128, 128>}, {pipeline_mode = #tpu.pipeline_mode<synchronous>, transform_indices = @transform_6, window_bounds = array<i64: 1, 128>}, {transform_indices = @transform_7, window_bounds = array<i64: 8, 128>}]} {
    %c0 = arith.constant 0 : index
    %c0_0 = arith.constant 0 : index
    %0 = vector.load %arg1[%c0, %c0_0] : memref<8x128xbf16, #tpu.memory_space<vmem>>, vector<8x128xbf16>
    %c0_1 = arith.constant 0 : index
    %c0_2 = arith.constant 0 : index
    %1 = vector.load %arg2[%c0_1, %c0_2] : memref<128x128xbf16, #tpu.memory_space<vmem>>, vector<128x128xbf16>
    %c0_3 = arith.constant 0 : index
    %c0_4 = arith.constant 0 : index
    %2 = vector.load %arg3[%c0_3, %c0_4] : memref<1x128xf32, #tpu.memory_space<vmem>>, vector<1x128xf32>
    %cst = arith.constant dense<0.000000e+00> : vector<8x128xf32>
    %3 = tpu.matmul %0, %1, %cst {dimension_numbers = #tpu.dot_dimension_numbers<[1], [0], [0], [1], [0, 0, 1, 1], [], []>} : vector<8x128xbf16>, vector<128x128xbf16>, vector<8x128xf32> -> vector<8x128xf32>
    %4 = vector.broadcast %2 : vector<1x128xf32> to vector<8x128xf32>
    %5 = arith.addf %3, %4 : vector<8x128xf32>
    %cst_5 = arith.constant 0.00999999977 : f32
    %6 = vector.broadcast %cst_5 : f32 to vector<8x128xf32>
    %7 = arith.mulf %6, %5 : vector<8x128xf32>
    %8 = arith.maximumf %5, %7 : vector<8x128xf32>
    %9 = arith.truncf %8 : vector<8x128xf32> to vector<8x128xbf16>
    %c0_6 = arith.constant 0 : index
    %c0_7 = arith.constant 0 : index
    %10 = vector.load %arg4[%c0_6, %c0_7] : memref<128x128xbf16, #tpu.memory_space<vmem>>, vector<128x128xbf16>
    %c0_8 = arith.constant 0 : index
    %c0_9 = arith.constant 0 : index
    %11 = vector.load %arg5[%c0_8, %c0_9] : memref<1x128xf32, #tpu.memory_space<vmem>>, vector<1x128xf32>
    %cst_10 = arith.constant dense<0.000000e+00> : vector<8x128xf32>
    %12 = tpu.matmul %9, %10, %cst_10 {dimension_numbers = #tpu.dot_dimension_numbers<[1], [0], [0], [1], [0, 0, 1, 1], [], []>} : vector<8x128xbf16>, vector<128x128xbf16>, vector<8x128xf32> -> vector<8x128xf32>
    %13 = vector.broadcast %11 : vector<1x128xf32> to vector<8x128xf32>
    %14 = arith.addf %12, %13 : vector<8x128xf32>
    %cst_11 = arith.constant 0.00999999977 : f32
    %15 = vector.broadcast %cst_11 : f32 to vector<8x128xf32>
    %16 = arith.mulf %15, %14 : vector<8x128xf32>
    %17 = arith.maximumf %14, %16 : vector<8x128xf32>
    %18 = arith.truncf %17 : vector<8x128xf32> to vector<8x128xbf16>
    %c0_12 = arith.constant 0 : index
    %c0_13 = arith.constant 0 : index
    %19 = vector.load %arg6[%c0_12, %c0_13] : memref<128x128xbf16, #tpu.memory_space<vmem>>, vector<128x128xbf16>
    %c0_14 = arith.constant 0 : index
    %c0_15 = arith.constant 0 : index
    %20 = vector.load %arg7[%c0_14, %c0_15] : memref<1x128xf32, #tpu.memory_space<vmem>>, vector<1x128xf32>
    %cst_16 = arith.constant dense<0.000000e+00> : vector<8x128xf32>
    %21 = tpu.matmul %18, %19, %cst_16 {dimension_numbers = #tpu.dot_dimension_numbers<[1], [0], [0], [1], [0, 0, 1, 1], [], []>} : vector<8x128xbf16>, vector<128x128xbf16>, vector<8x128xf32> -> vector<8x128xf32>
    %22 = vector.broadcast %20 : vector<1x128xf32> to vector<8x128xf32>
    %23 = arith.addf %21, %22 : vector<8x128xf32>
    %c0_17 = arith.constant 0 : index
    %c0_18 = arith.constant 0 : index
    %24 = vector.load %arg8[%c0_17, %c0_18] : memref<8x128xf32, #tpu.memory_space<vmem>>, vector<8x128xf32>
    tpu.vector_store %arg8[%c0_17, %c0_18], %23 {strides = array<i32>} : memref<8x128xf32, #tpu.memory_space<vmem>>, vector<8x128xf32>,
    return
  }
  func.func @transform_0(%arg0: i32) -> (i32, i32) {
    %c0_i32 = arith.constant 0 : i32
    %c0_i32_0 = arith.constant 0 : i32
    return %arg0, %c0_i32 : i32, i32
  }
  func.func @transform_1(%arg0: i32) -> (i32, i32) {
    %c0_i32 = arith.constant 0 : i32
    %c0_i32_0 = arith.constant 0 : i32
    %c0_i32_1 = arith.constant 0 : i32
    return %c0_i32, %c0_i32_0 : i32, i32
  }
  func.func @transform_2(%arg0: i32) -> (i32, i32) {
    %c0_i32 = arith.constant 0 : i32
    %c0_i32_0 = arith.constant 0 : i32
    %c0_i32_1 = arith.constant 0 : i32
    return %c0_i32, %c0_i32_0 : i32, i32
  }
  func.func @transform_3(%arg0: i32) -> (i32, i32) {
    %c0_i32 = arith.constant 0 : i32
    %c0_i32_0 = arith.constant 0 : i32
    %c0_i32_1 = arith.constant 0 : i32
    return %c0_i32, %c0_i32_0 : i32, i32
  }
  func.func @transform_4(%arg0: i32) -> (i32, i32) {
    %c0_i32 = arith.constant 0 : i32
    %c0_i32_0 = arith.constant 0 : i32
    %c0_i32_1 = arith.constant 0 : i32
    return %c0_i32, %c0_i32_0 : i32, i32
  }
  func.func @transform_5(%arg0: i32) -> (i32, i32) {
    %c0_i32 = arith.constant 0 : i32
    %c0_i32_0 = arith.constant 0 : i32
    %c0_i32_1 = arith.constant 0 : i32
    return %c0_i32, %c0_i32_0 : i32, i32
  }
  func.func @transform_6(%arg0: i32) -> (i32, i32) {
    %c0_i32 = arith.constant 0 : i32
    %c0_i32_0 = arith.constant 0 : i32
    %c0_i32_1 = arith.constant 0 : i32
    return %c0_i32, %c0_i32_0 : i32, i32
  }
  func.func @transform_7(%arg0: i32) -> (i32, i32) {
    %c0_i32 = arith.constant 0 : i32
    %c0_i32_0 = arith.constant 0 : i32
    return %arg0, %c0_i32 : i32, i32
  }
}

</mosaic_0001>

<bundles_post_ra>
// kernel: tpu_custom_call.1
= control target key start
LH: loop header
LB: loop body
LE: loop exit
PB: predicated region body
PF: predicated region fallthrough
CT: control target
= control target key end

     0   :  { %12 = vsyncpa [#allocation3], 0  ;;  %s687_s0 = inlined_call_operand.hbm [shape: bf16[8,128], index: 0, kind: input, shape index: {}]   ;;  %s688_s1 = inlined_call_operand.hbm [shape: bf16[128,128], index: 1, kind: input, shape index: {}]   ;;  %s689_s2 = inlined_call_operand.vmem [shape: f32[1,128], index: 2, kind: input, shape index: {}]   ;;  %s690_s3 = inlined_call_operand.hbm [shape: bf16[128,128], index: 3, kind: input, shape index: {}]   ;;  %s691_s4 = inlined_call_operand.vmem [shape: f32[1,128], index: 4, kind: input, shape index: {}]   ;;  %s692_s5 = inlined_call_operand.hbm [shape: bf16[128,128], index: 5, kind: input, shape index: {}]   ;;  %s693_s6 = inlined_call_operand.vmem [shape: f32[1,128], index: 6, kind: input, shape index: {}]   ;;  %s694_s7 = inlined_call_operand.hbm [shape: f32[8,128], index: 7, kind: output, shape index: {}]  }
   0x1   :  { %13 = vsyncpa [#allocation6], 0 }
   0x2   :  { %14 = vsyncpa [#allocation9], 0  ;;  %s31_s26 = sshll.u32 %s688_s1, 4  ;;  %s32_s26 = int_to_ptr.hbm [resolvable:$true] %s31_s26 }
   0x3   :  { %15 = vsyncpa [#allocation4], 0  ;;  %s616_s27 = smov [#allocation5]   ;;  %s21_s8 = sshll.u32 %s687_s0, 4  ;;  %s22_s8 = int_to_ptr.hbm [resolvable:$true] %s21_s8 }
   0x4   :  { %s33_s28 = sshll.u32 %s616_s27, 4  ;;  %s617_s9 = smov 64   ;;  %s34_s28 = int_to_ptr.vmem [resolvable:$true] %s33_s28 }
   0x5   :  { %s618_s10 = smov 4   ;;  %s619_s11 = smov [#allocation2]  }
   0x6   :  { %39 = dma.hbm_to_vmem [thread:$0]  %s32_s26, 1024, %s34_s28, [#allocation6], %s617_s9, %s617_s9, %s618_s10  }
   0x7   :  { %s23_s12 = sshll.u32 %s619_s11, 4  ;;  %s46_s15 = sshll.u32 %s690_s3, 4  ;;  %s24_s12 = int_to_ptr.vmem [resolvable:$true] %s23_s12  ;;  %s47_s15 = int_to_ptr.hbm [resolvable:$true] %s46_s15 }
   0x8   :  { %26 = dma.hbm_to_vmem [thread:$0]  %s22_s8, 64, %s24_s12, [#allocation3]  }
   0x9   :  { %s61_s17 = sshll.u32 %s692_s5, 4  ;;  %s620_s18 = smov [#allocation7]   ;;  %s62_s17 = int_to_ptr.hbm [resolvable:$true] %s61_s17 }
   0xa   :  { %s48_s19 = sshll.u32 %s620_s18, 4  ;;  %s621_s0 = smov [#allocation8]   ;;  %s49_s19 = int_to_ptr.vmem [resolvable:$true] %s48_s19 }
   0xb   :  { %54 = dma.hbm_to_vmem [thread:$0]  %s47_s15, 1024, %s49_s19, [#allocation6], %s617_s9, %s617_s9, %s618_s10  }
   0xc   :  { %s63_s20 = sshll.u32 %s621_s0, 4  ;;  %s64_s20 = int_to_ptr.vmem [resolvable:$true] %s63_s20 }
   0xd   :  { %69 = dma.hbm_to_vmem [thread:$0]  %s62_s17, 1024, %s64_s20, [#allocation9], %s617_s9, %s617_s9, %s618_s10  }
   0xe   :  { %608 = dma.done.wait [#allocation3], 64  }
   0xf   :  { %609 = vsyncadd [#allocation3], 4294967232 }
  0x10   :  { %610 = dma.done.wait [#allocation6], 2048  }
  0x11   :  { %611 = vsyncadd [#allocation6], 4294965248 }
  0x12   :  { %612 = dma.done.wait [#allocation9], 1024  }
  0x13   :  { %613 = vsyncadd [#allocation9], 4294966272  ;;  %v461_v0 = vld [vmem:[#allocation5 + $0x38] sm:$0xff]  ;;  %v460_v1 = vld [vmem:[#allocation5 + $0x30] sm:$0xff]  ;;  %s622_s24 = smov [#allocation10]   ;;  %s346_s28 = sshll.u32 %s694_s7, 4  ;;  %s347_s28 = int_to_ptr.hbm [resolvable:$true] %s346_s28 }
  0x14   :  { %157 = vmatpush.bf16.msra.mxu0 %v461_v0  ;;  %v469_v2 = vld [vmem:[#allocation7 + $0x38] sm:$0xff]  ;;  %v468_v3 = vld [vmem:[#allocation7 + $0x30] sm:$0xff]  ;;  %v459_v4 = vld [vmem:[#allocation5 + $0x28] sm:$0xff]  ;;  %s344_s25 = sshll.u32 %s622_s24, 4  ;;  %s345_s25 = int_to_ptr.vmem [resolvable:$true] %s344_s25 }
  0x15   :  { %241 = vmatpush.bf16.msra.mxu1 %v469_v2  ;;  %v467_v5 = vld [vmem:[#allocation7 + $0x28] sm:$0xff]  ;;  %v458_v6 = vld [vmem:[#allocation5 + $0x20] sm:$0xff]  ;;  %v457_v8 = vld [vmem:[#allocation5 + $0x18] sm:$0xff] }
  0x16   :  { %v466_v7 = vld [vmem:[#allocation7 + $0x20] sm:$0xff]  ;;  %v465_v9 = vld [vmem:[#allocation7 + $0x18] sm:$0xff]  ;;  %v456_v10 = vld [vmem:[#allocation5 + $0x10] sm:$0xff] }
  0x17   :  { %v464_v11 = vld [vmem:[#allocation7 + $0x10] sm:$0xff]  ;;  %v455_v12 = vld [vmem:[#allocation5 + $0x8] sm:$0xff]  ;;  %v454_v13 = vld [vmem:[#allocation5] sm:$0xff] }
  0x18   :  { %158 = vmatpush.bf16.msra.mxu0 %v460_v1  ;;  %v88_v14 = vld [vmem:[#allocation2] sm:$0xf]  ;;  %v463_v15 = vld [vmem:[#allocation7 + $0x8] sm:$0xff]  ;;  %v462_v16 = vld [vmem:[#allocation7] sm:$0xff] }
  0x19   :  { %242 = vmatpush.bf16.msra.mxu1 %v468_v3  ;;  %v477_v17 = vld [vmem:[#allocation8 + $0x38] sm:$0xff]  ;;  %v476_v18 = vld [vmem:[#allocation8 + $0x30] sm:$0xff]  ;;  %v475_v19 = vld [vmem:[#allocation8 + $0x28] sm:$0xff] }
  0x1a   :  { %325 = vmatpush.bf16.msra.mxu2 %v477_v17  ;;  %v474_v20 = vld [vmem:[#allocation8 + $0x20] sm:$0xff]  ;;  %v473_v21 = vld [vmem:[#allocation8 + $0x18] sm:$0xff]  ;;  %v472_v22 = vld [vmem:[#allocation8 + $0x10] sm:$0xff] }
  0x1b   :  { %v485_v23 = vld [vmem:[%s689_s2] ss:$0 sm:$0xff]  ;;  %v471_v30 = vld [vmem:[#allocation8 + $0x8] sm:$0xff]  ;;  %v470_v31 = vld [vmem:[#allocation8] sm:$0xff] }
  0x1c   :  { %159 = vmatpush.bf16.msra.mxu0 %v459_v4  ;;  %v486_v32 = vld [vmem:[%s691_s4] ss:$0 sm:$0xff] }
  0x1d   :  { %243 = vmatpush.bf16.msra.mxu1 %v467_v5  ;;  %v487_v39 = vld [vmem:[%s693_s6] ss:$0 sm:$0xff] }
  0x1e   :  { %326 = vmatpush.bf16.msra.mxu2 %v476_v18 }
  0x20   :  { %160 = vmatpush.bf16.msra.mxu0 %v458_v6 }
  0x21   :  { %244 = vmatpush.bf16.msra.mxu1 %v466_v7 }
  0x22   :  { %327 = vmatpush.bf16.msra.mxu2 %v475_v19 }
  0x24   :  { %161 = vmatpush.bf16.msra.mxu0 %v457_v8 }
  0x25   :  { %245 = vmatpush.bf16.msra.mxu1 %v465_v9 }
  0x26   :  { %328 = vmatpush.bf16.msra.mxu2 %v474_v20 }
  0x28   :  { %162 = vmatpush.bf16.msra.mxu0 %v456_v10 }
  0x29   :  { %246 = vmatpush.bf16.msra.mxu1 %v464_v11 }
  0x2a   :  { %329 = vmatpush.bf16.msra.mxu2 %v473_v21 }
  0x2c   :  { %163 = vmatpush.bf16.msra.mxu0 %v455_v12 }
  0x2d   :  { %247 = vmatpush.bf16.msra.mxu1 %v463_v15 }
  0x2e   :  { %330 = vmatpush.bf16.msra.mxu2 %v472_v22 }
  0x30   :  { %164 = vmatpush.bf16.msra.mxu0 %v454_v13 }
  0x31   :  { %248 = vmatpush.bf16.msra.mxu1 %v462_v16 }
  0x32   :  { %331 = vmatpush.bf16.msra.mxu2 %v471_v30 }
  0x33   :  { %165 = vmatmul.bf16.vlgmr.msra.gmra.mxu0 %v88_v14 }
  0x36   :  { %332 = vmatpush.bf16.msra.mxu2 %v470_v31 }
  0xb0   :  { %v166_v24 = vpop.f32.mrf.mxu0 }
  0xb1   :  { %v167_v25 = vadd.f32 %v485_v23, %v166_v24 }
  0xb3   :  { %v170_v26 = vmul.f32 0.01, %v167_v25 }
  0xb5   :  { %v171_v27 = vmax.f32 %v167_v25, %v170_v26 }
  0xb7   :  { %v172_v28 = vpack.c.bf16 %v171_v27, %v171_v27 }
  0xb8   :  { %v168_v29 = vpop.f32.mrf.mxu0 }
  0xb9   :  { %249 = vmatmul.bf16.vlgmr.msra.gmra.mxu1 %v172_v28 }
 0x136   :  { %v250_v33 = vpop.f32.mrf.mxu1 }
 0x137   :  { %v251_v34 = vadd.f32 %v486_v32, %v250_v33 }
 0x139   :  { %v254_v35 = vmul.f32 0.01, %v251_v34 }
 0x13b   :  { %v255_v36 = vmax.f32 %v251_v34, %v254_v35 }
 0x13d   :  { %v256_v37 = vpack.c.bf16 %v255_v36, %v255_v36 }
 0x13e   :  { %v252_v38 = vpop.f32.mrf.mxu1 }
 0x13f   :  { %333 = vmatmul.bf16.vlgmr.msra.gmra.mxu2 %v256_v37 }
 0x1c2   :  { %v334_v40 = vpop.f32.mrf.mxu2 }
 0x1c3   :  { %v335_v41 = vadd.f32 %v487_v39, %v334_v40 }
 0x1c5   :  { %338 = vst [vmem:[#allocation10] sm:$0xff] %v335_v41 }
 0x1c6   :  { %349 = dma.vmem_to_hbm [thread:$0]  %s345_s25, 128, %s347_s28, [#allocation4]  }
 0x1ca   :  { %v336_v42 = vpop.f32.mrf.mxu2 }
 0x1cb   :  { %614 = dma.done.wait [#allocation4], 128  }
 0x1cc   :  { %615 = vsyncadd [#allocation4], 4294967168 }
 0x1cd   :  { %354 = vsyncpa [#allocation3], 1 }
 0x1ce   :  { %355 = vsyncpa [#allocation6], 1 }
 0x1cf   :  { %356 = vsyncpa [#allocation9], 1 }
 0x1d0   :  { %357 = vsyncpa [#allocation4], 1 }

// kernel: tpu_custom_call.1
= control target key start
LH: loop header
LB: loop body
LE: loop exit
PB: predicated region body
PF: predicated region fallthrough
CT: control target
= control target key end

     0   :  { %12 = vsyncpa [#allocation3], 0  ;;  %s687_s0 = inlined_call_operand.hbm [shape: bf16[8,128], index: 0, kind: input, shape index: {}]   ;;  %s688_s1 = inlined_call_operand.hbm [shape: bf16[128,128], index: 1, kind: input, shape index: {}]   ;;  %s689_s2 = inlined_call_operand.vmem [shape: f32[1,128], index: 2, kind: input, shape index: {}]   ;;  %s690_s3 = inlined_call_operand.hbm [shape: bf16[128,128], index: 3, kind: input, shape index: {}]   ;;  %s691_s4 = inlined_call_operand.vmem [shape: f32[1,128], index: 4, kind: input, shape index: {}]   ;;  %s692_s5 = inlined_call_operand.hbm [shape: bf16[128,128], index: 5, kind: input, shape index: {}]   ;;  %s693_s6 = inlined_call_operand.vmem [shape: f32[1,128], index: 6, kind: input, shape index: {}]   ;;  %s694_s7 = inlined_call_operand.hbm [shape: f32[8,128], index: 7, kind: output, shape index: {}]  }
   0x1   :  { %13 = vsyncpa [#allocation6], 0 }
   0x2   :  { %14 = vsyncpa [#allocation9], 0  ;;  %s31_s26 = sshll.u32 %s688_s1, 4  ;;  %s32_s26 = int_to_ptr.hbm [resolvable:$true] %s31_s26 }
   0x3   :  { %15 = vsyncpa [#allocation4], 0  ;;  %s616_s27 = smov [#allocation5]   ;;  %s21_s8 = sshll.u32 %s687_s0, 4  ;;  %s22_s8 = int_to_ptr.hbm [resolvable:$true] %s21_s8 }
   0x4   :  { %s33_s28 = sshll.u32 %s616_s27, 4  ;;  %s617_s9 = smov 64   ;;  %s34_s28 = int_to_ptr.vmem [resolvable:$true] %s33_s28 }
   0x5   :  { %s618_s10 = smov 4   ;;  %s619_s11 = smov [#allocation2]  }
   0x6   :  { %39 = dma.hbm_to_vmem [thread:$0]  %s32_s26, 1024, %s34_s28, [#allocation6], %s617_s9, %s617_s9, %s618_s10  }
   0x7   :  { %s23_s12 = sshll.u32 %s619_s11, 4  ;;  %s46_s15 = sshll.u32 %s690_s3, 4  ;;  %s24_s12 = int_to_ptr.vmem [resolvable:$true] %s23_s12  ;;  %s47_s15 = int_to_ptr.hbm [resolvable:$true] %s46_s15 }
   0x8   :  { %26 = dma.hbm_to_vmem [thread:$0]  %s22_s8, 64, %s24_s12, [#allocation3]  }
   0x9   :  { %s61_s17 = sshll.u32 %s692_s5, 4  ;;  %s620_s18 = smov [#allocation7]   ;;  %s62_s17 = int_to_ptr.hbm [resolvable:$true] %s61_s17 }
   0xa   :  { %s48_s19 = sshll.u32 %s620_s18, 4  ;;  %s621_s0 = smov [#allocation8]   ;;  %s49_s19 = int_to_ptr.vmem [resolvable:$true] %s48_s19 }
   0xb   :  { %54 = dma.hbm_to_vmem [thread:$0]  %s47_s15, 1024, %s49_s19, [#allocation6], %s617_s9, %s617_s9, %s618_s10  }
   0xc   :  { %s63_s20 = sshll.u32 %s621_s0, 4  ;;  %s64_s20 = int_to_ptr.vmem [resolvable:$true] %s63_s20 }
   0xd   :  { %69 = dma.hbm_to_vmem [thread:$0]  %s62_s17, 1024, %s64_s20, [#allocation9], %s617_s9, %s617_s9, %s618_s10  }
   0xe   :  { %608 = dma.done.wait [#allocation3], 64  }
   0xf   :  { %609 = vsyncadd [#allocation3], 4294967232 }
  0x10   :  { %610 = dma.done.wait [#allocation6], 2048  }
  0x11   :  { %611 = vsyncadd [#allocation6], 4294965248 }
  0x12   :  { %612 = dma.done.wait [#allocation9], 1024  }
  0x13   :  { %613 = vsyncadd [#allocation9], 4294966272  ;;  %v461_v0 = vld [vmem:[#allocation5 + $0x38] sm:$0xff]  ;;  %v460_v1 = vld [vmem:[#allocation5 + $0x30] sm:$0xff]  ;;  %s622_s24 = smov [#allocation10]   ;;  %s346_s28 = sshll.u32 %s694_s7, 4  ;;  %s347_s28 = int_to_ptr.hbm [resolvable:$true] %s346_s28 }
  0x14   :  { %157 = vmatpush.bf16.msra.mxu0 %v461_v0  ;;  %v469_v2 = vld [vmem:[#allocation7 + $0x38] sm:$0xff]  ;;  %v468_v3 = vld [vmem:[#allocation7 + $0x30] sm:$0xff]  ;;  %v459_v4 = vld [vmem:[#allocation5 + $0x28] sm:$0xff]  ;;  %s344_s25 = sshll.u32 %s622_s24, 4  ;;  %s345_s25 = int_to_ptr.vmem [resolvable:$true] %s344_s25 }
  0x15   :  { %241 = vmatpush.bf16.msra.mxu1 %v469_v2  ;;  %v467_v5 = vld [vmem:[#allocation7 + $0x28] sm:$0xff]  ;;  %v458_v6 = vld [vmem:[#allocation5 + $0x20] sm:$0xff]  ;;  %v457_v8 = vld [vmem:[#allocation5 + $0x18] sm:$0xff] }
  0x16   :  { %v466_v7 = vld [vmem:[#allocation7 + $0x20] sm:$0xff]  ;;  %v465_v9 = vld [vmem:[#allocation7 + $0x18] sm:$0xff]  ;;  %v456_v10 = vld [vmem:[#allocation5 + $0x10] sm:$0xff] }
  0x17   :  { %v464_v11 = vld [vmem:[#allocation7 + $0x10] sm:$0xff]  ;;  %v455_v12 = vld [vmem:[#allocation5 + $0x8] sm:$0xff]  ;;  %v454_v13 = vld [vmem:[#allocation5] sm:$0xff] }
  0x18   :  { %158 = vmatpush.bf16.msra.mxu0 %v460_v1  ;;  %v88_v14 = vld [vmem:[#allocation2] sm:$0xf]  ;;  %v463_v15 = vld [vmem:[#allocation7 + $0x8] sm:$0xff]  ;;  %v462_v16 = vld [vmem:[#allocation7] sm:$0xff] }
  0x19   :  { %242 = vmatpush.bf16.msra.mxu1 %v468_v3  ;;  %v477_v17 = vld [vmem:[#allocation8 + $0x38] sm:$0xff]  ;;  %v476_v18 = vld [vmem:[#allocation8 + $0x30] sm:$0xff]  ;;  %v475_v19 = vld [vmem:[#allocation8 + $0x28] sm:$0xff] }
  0x1a   :  { %325 = vmatpush.bf16.msra.mxu2 %v477_v17  ;;  %v474_v20 = vld [vmem:[#allocation8 + $0x20] sm:$0xff]  ;;  %v473_v21 = vld [vmem:[#allocation8 + $0x18] sm:$0xff]  ;;  %v472_v22 = vld [vmem:[#allocation8 + $0x10] sm:$0xff] }
  0x1b   :  { %v485_v23 = vld [vmem:[%s689_s2] ss:$0 sm:$0xff]  ;;  %v471_v30 = vld [vmem:[#allocation8 + $0x8] sm:$0xff]  ;;  %v470_v31 = vld [vmem:[#allocation8] sm:$0xff] }
  0x1c   :  { %159 = vmatpush.bf16.msra.mxu0 %v459_v4  ;;  %v486_v32 = vld [vmem:[%s691_s4] ss:$0 sm:$0xff] }
  0x1d   :  { %243 = vmatpush.bf16.msra.mxu1 %v467_v5  ;;  %v487_v39 = vld [vmem:[%s693_s6] ss:$0 sm:$0xff] }
  0x1e   :  { %326 = vmatpush.bf16.msra.mxu2 %v476_v18 }
  0x20   :  { %160 = vmatpush.bf16.msra.mxu0 %v458_v6 }
  0x21   :  { %244 = vmatpush.bf16.msra.mxu1 %v466_v7 }
  0x22   :  { %327 = vmatpush.bf16.msra.mxu2 %v475_v19 }
  0x24   :  { %161 = vmatpush.bf16.msra.mxu0 %v457_v8 }
  0x25   :  { %245 = vmatpush.bf16.msra.mxu1 %v465_v9 }
  0x26   :  { %328 = vmatpush.bf16.msra.mxu2 %v474_v20 }
  0x28   :  { %162 = vmatpush.bf16.msra.mxu0 %v456_v10 }
  0x29   :  { %246 = vmatpush.bf16.msra.mxu1 %v464_v11 }
  0x2a   :  { %329 = vmatpush.bf16.msra.mxu2 %v473_v21 }
  0x2c   :  { %163 = vmatpush.bf16.msra.mxu0 %v455_v12 }
  0x2d   :  { %247 = vmatpush.bf16.msra.mxu1 %v463_v15 }
  0x2e   :  { %330 = vmatpush.bf16.msra.mxu2 %v472_v22 }
  0x30   :  { %164 = vmatpush.bf16.msra.mxu0 %v454_v13 }
  0x31   :  { %248 = vmatpush.bf16.msra.mxu1 %v462_v16 }
  0x32   :  { %331 = vmatpush.bf16.msra.mxu2 %v471_v30 }
  0x33   :  { %165 = vmatmul.bf16.vlgmr.msra.gmra.mxu0 %v88_v14 }
  0x36   :  { %332 = vmatpush.bf16.msra.mxu2 %v470_v31 }
  0xb0   :  { %v166_v24 = vpop.f32.mrf.mxu0 }
  0xb1   :  { %v167_v25 = vadd.f32 %v485_v23, %v166_v24 }
  0xb3   :  { %v170_v26 = vmul.f32 0.01, %v167_v25 }
  0xb5   :  { %v171_v27 = vmax.f32 %v167_v25, %v170_v26 }
  0xb7   :  { %v172_v28 = vpack.c.bf16 %v171_v27, %v171_v27 }
  0xb8   :  { %v168_v29 = vpop.f32.mrf.mxu0 }
  0xb9   :  { %249 = vmatmul.bf16.vlgmr.msra.gmra.mxu1 %v172_v28 }
 0x136   :  { %v250_v33 = vpop.f32.mrf.mxu1 }
 0x137   :  { %v251_v34 = vadd.f32 %v486_v32, %v250_v33 }
 0x139   :  { %v254_v35 = vmul.f32 0.01, %v251_v34 }
 0x13b   :  { %v255_v36 = vmax.f32 %v251_v34, %v254_v35 }
 0x13d   :  { %v256_v37 = vpack.c.bf16 %v255_v36, %v255_v36 }
 0x13e   :  { %v252_v38 = vpop.f32.mrf.mxu1 }
 0x13f   :  { %333 = vmatmul.bf16.vlgmr.msra.gmra.mxu2 %v256_v37 }
 0x1c2   :  { %v334_v40 = vpop.f32.mrf.mxu2 }
 0x1c3   :  { %v335_v41 = vadd.f32 %v487_v39, %v334_v40 }
 0x1c5   :  { %338 = vst [vmem:[#allocation10] sm:$0xff] %v335_v41 }
 0x1c6   :  { %349 = dma.vmem_to_hbm [thread:$0]  %s345_s25, 128, %s347_s28, [#allocation4]  }
 0x1ca   :  { %v336_v42 = vpop.f32.mrf.mxu2 }
 0x1cb   :  { %614 = dma.done.wait [#allocation4], 128  }
 0x1cc   :  { %615 = vsyncadd [#allocation4], 4294967168 }
 0x1cd   :  { %354 = vsyncpa [#allocation3], 1 }
 0x1ce   :  { %355 = vsyncpa [#allocation6], 1 }
 0x1cf   :  { %356 = vsyncpa [#allocation9], 1 }
 0x1d0   :  { %357 = vsyncpa [#allocation4], 1 }

</bundles_post_ra>
